<compile_context>
chip_gen: v7x
topology: tpu7x:2x2x1
jax: 0.10.0
libtpu: 0.0.40
codegen_flags: <defaults>
</compile_context>

<pallas_src>
import jax
import jax.numpy as jnp
import numpy as np
from jax.experimental import pallas as pl
from jax.experimental.pallas import tpu as pltpu

# ---------------- problem sizes (small, synthetic) ----------------
S = 8            # sent_length
B = 8            # batch_size
V = 32           # vocabulary size
D = 300          # embedding dim (fixed by the module)
NUM_CLASSES = 2
PAD_IDX = 1      # simulated vocabulary.stoi['<pad>']

LANE = 128       # lane width
SUBLANE = 8      # f32 sublane count
C_PAD = 8        # padded class (N) dim; block == full array dim -> legal, sliced to 2 outside


def _cbow_kernel(tokens_ref, p_ref, out_ref):
    """One batch tile.

    tokens_ref: (tile_b, s_len) int32  -- batch on sublanes, positions on lanes
    p_ref:      (v_pad, C_PAD) f32     -- folded emb @ W^T, <pad> row zeroed
    out_ref:    (tile_b, C_PAD) f32    -- scores tile (bias added outside)
    """
    tile_b, s_len = tokens_ref.shape
    v_pad = p_ref.shape[0]

    tokens = tokens_ref[...]                                          # (tile_b, s_len)
    vocab_iota = jax.lax.broadcasted_iota(jnp.int32, (tile_b, v_pad), 1)

    # counts[b, v] = #times token v appears in row b, accumulated one sentence
    # position at a time (static, fully unrolled; live set stays at a few vregs).
    # Pad masking is NOT needed here: P's <pad> row is zero.
    counts = jnp.zeros((tile_b, v_pad), jnp.float32)
    for s in range(s_len):
        tok_s = tokens[:, s:s + 1]                                    # (tile_b, 1)
        counts = counts + (tok_s == vocab_iota).astype(jnp.float32)

    # Single small MXU matmul: (tile_b, v_pad) @ (v_pad, C_PAD).
    out_ref[...] = jnp.dot(counts, p_ref[...],
                           preferred_element_type=jnp.float32)


@jax.jit
def cbow_forward(tokens, embeddings, w, b):
    """tokens: (S, B) int32; embeddings: (V, D); w: (2, D); b: (2,) -> (B, 2)."""
    s_len, batch = tokens.shape
    v, _ = embeddings.shape
    num_classes = w.shape[0]

    # Adaptive batch tile: don't pad a tiny batch up to 128 rows.
    tile_b = min(128, pl.cdiv(batch, SUBLANE) * SUBLANE)
    b_pad = pl.cdiv(batch, tile_b) * tile_b
    v_pad = pl.cdiv(v, LANE) * LANE

    # Algebraic fold (associativity): scores = counts @ (emb @ W^T) + b.
    # P is only (V, 2); the (V, 300) table never reaches the kernel.  Pin the
    # fold to HIGHEST precision so it doesn't run as approximate bf16 passes.
    p = jnp.dot(embeddings, w.T, precision=jax.lax.Precision.HIGHEST)
    p = p.at[PAD_IDX].set(0.0)                                # fold <pad> masking into P
    p_pad = jnp.zeros((v_pad, C_PAD), jnp.float32).at[:v, :num_classes].set(p)

    # Tokens transposed to (b_pad, s_len): batch on sublanes so each per-position
    # compare in the kernel is a lane-broadcast (no relayout in the inner loop).
    # Padded batch rows are <pad> tokens -> zero scores, sliced off below.
    tok_t = jnp.full((b_pad, s_len), PAD_IDX, jnp.int32).at[:batch, :].set(tokens.T)

    grid = (b_pad // tile_b,)
    # Honest advisory estimate: P is DMA'd once (constant index_map).
    flops = 2 * b_pad * v_pad * C_PAD
    bytes_accessed = tok_t.size * 4 + p_pad.size * 4 + b_pad * C_PAD * 4

    out = pl.pallas_call(
        _cbow_kernel,
        out_shape=jax.ShapeDtypeStruct((b_pad, C_PAD), jnp.float32),
        grid=grid,
        in_specs=[
            pl.BlockSpec((tile_b, s_len), lambda i: (i, 0)),   # per-tile tokens
            pl.BlockSpec((v_pad, C_PAD), lambda i: (0, 0)),    # folded projection P
        ],
        out_specs=pl.BlockSpec((tile_b, C_PAD), lambda i: (i, 0)),
        compiler_params=pltpu.CompilerParams(
            dimension_semantics=("parallel",)),
        cost_estimate=pl.CostEstimate(
            flops=flops, transcendentals=0, bytes_accessed=bytes_accessed),
    )(tok_t, p_pad)

    # Bias added outside the kernel; slice the padded slab down to (B, 2).
    return out[:batch, :num_classes] + b[None, :]


def cbow_reference(tokens, embeddings, w, b):
    """Pure-JAX reference mirroring the PyTorch forward."""
    s_len, batch = tokens.shape
    v, d = embeddings.shape
    flat = tokens.reshape(-1)
    sel = embeddings[flat].reshape(s_len, batch, d)
    pad = (flat == PAD_IDX).astype(jnp.float32).reshape(s_len, batch)
    padded = sel * (1.0 - pad)[:, :, None]
    summed = jnp.sum(padded, axis=0)                          # (B, D)
    return jnp.dot(summed, w.T, precision=jax.lax.Precision.HIGHEST) + b


if __name__ == "__main__":
    key = jax.random.PRNGKey(0)
    k_emb, k_w, k_b, k_tok = jax.random.split(key, 4)

    # Embeddings: xavier_normal_ on (V, 300) -> std = sqrt(2 / (V + 300))
    xavier_std = float(np.sqrt(2.0 / (V + D)))
    embeddings = jax.random.normal(k_emb, (V, D), jnp.float32) * xavier_std

    # nn.Linear(300, 2) default init: U(-1/sqrt(300), 1/sqrt(300))
    bound = 1.0 / float(np.sqrt(D))
    w = jax.random.uniform(k_w, (NUM_CLASSES, D), jnp.float32, -bound, bound)
    b = jax.random.uniform(k_b, (NUM_CLASSES,), jnp.float32, -bound, bound)

    # Token ids in [0, V), including some <pad> (= PAD_IDX) entries.
    tokens = jax.random.randint(k_tok, (S, B), 0, V, jnp.int32)

    out = cbow_forward(tokens, embeddings, w, b)
    out = jax.block_until_ready(out)

    ref = cbow_reference(tokens, embeddings, w, b)
    assert out.shape == (B, NUM_CLASSES)
    assert np.allclose(np.asarray(out), np.asarray(ref), rtol=1e-4, atol=1e-4)

    print("KERNEL_OK")
</pallas_src>

<mosaic_0001>
module attributes {stable_mosaic.version = 11 : i64} {
  func.func @_cbow_kernel(%arg0: i32, %arg1: memref<8x8xi32, #tpu.memory_space<vmem>>, %arg2: memref<128x8xf32, #tpu.memory_space<vmem>>, %arg3: memref<8x8xf32, #tpu.memory_space<vmem>>) attributes {dimension_semantics = [#tpu.dimension_semantics<parallel>], iteration_bounds = array<i64: 1>, scalar_prefetch = 0 : i64, scratch_operands = 0 : i64, tpu.core_type = #tpu.core_type<tc>, window_params = [{transform_indices = @transform_0, window_bounds = array<i64: 8, 8>}, {pipeline_mode = #tpu.pipeline_mode<synchronous>, transform_indices = @transform_1, window_bounds = array<i64: 128, 8>}, {transform_indices = @transform_2, window_bounds = array<i64: 8, 8>}]} {
    %c0 = arith.constant 0 : index
    %c0_0 = arith.constant 0 : index
    %0 = vector.load %arg1[%c0, %c0_0] : memref<8x8xi32, #tpu.memory_space<vmem>>, vector<8x8xi32>
    %1 = tpu.iota {dimensions = array<i32: 1>} : vector<8x128xi32>
    %cst = arith.constant 0.000000e+00 : f32
    %2 = vector.broadcast %cst : f32 to vector<8x128xf32>
    %3 = vector.extract_strided_slice %0 {offsets = [0, 0], sizes = [8, 1], strides = [1, 1]} : vector<8x8xi32> to vector<8x1xi32>
    %4 = vector.broadcast %3 : vector<8x1xi32> to vector<8x128xi32>
    %5 = arith.cmpi eq, %4, %1 : vector<8x128xi32>
    %6 = arith.extui %5 : vector<8x128xi1> to vector<8x128xi32>
    %7 = arith.sitofp %6 : vector<8x128xi32> to vector<8x128xf32>
    %8 = arith.addf %2, %7 : vector<8x128xf32>
    %9 = vector.extract_strided_slice %0 {offsets = [0, 1], sizes = [8, 1], strides = [1, 1]} : vector<8x8xi32> to vector<8x1xi32>
    %10 = vector.broadcast %9 : vector<8x1xi32> to vector<8x128xi32>
    %11 = arith.cmpi eq, %10, %1 : vector<8x128xi32>
    %12 = arith.extui %11 : vector<8x128xi1> to vector<8x128xi32>
    %13 = arith.sitofp %12 : vector<8x128xi32> to vector<8x128xf32>
    %14 = arith.addf %8, %13 : vector<8x128xf32>
    %15 = vector.extract_strided_slice %0 {offsets = [0, 2], sizes = [8, 1], strides = [1, 1]} : vector<8x8xi32> to vector<8x1xi32>
    %16 = vector.broadcast %15 : vector<8x1xi32> to vector<8x128xi32>
    %17 = arith.cmpi eq, %16, %1 : vector<8x128xi32>
    %18 = arith.extui %17 : vector<8x128xi1> to vector<8x128xi32>
    %19 = arith.sitofp %18 : vector<8x128xi32> to vector<8x128xf32>
    %20 = arith.addf %14, %19 : vector<8x128xf32>
    %21 = vector.extract_strided_slice %0 {offsets = [0, 3], sizes = [8, 1], strides = [1, 1]} : vector<8x8xi32> to vector<8x1xi32>
    %22 = vector.broadcast %21 : vector<8x1xi32> to vector<8x128xi32>
    %23 = arith.cmpi eq, %22, %1 : vector<8x128xi32>
    %24 = arith.extui %23 : vector<8x128xi1> to vector<8x128xi32>
    %25 = arith.sitofp %24 : vector<8x128xi32> to vector<8x128xf32>
    %26 = arith.addf %20, %25 : vector<8x128xf32>
    %27 = vector.extract_strided_slice %0 {offsets = [0, 4], sizes = [8, 1], strides = [1, 1]} : vector<8x8xi32> to vector<8x1xi32>
    %28 = vector.broadcast %27 : vector<8x1xi32> to vector<8x128xi32>
    %29 = arith.cmpi eq, %28, %1 : vector<8x128xi32>
    %30 = arith.extui %29 : vector<8x128xi1> to vector<8x128xi32>
    %31 = arith.sitofp %30 : vector<8x128xi32> to vector<8x128xf32>
    %32 = arith.addf %26, %31 : vector<8x128xf32>
    %33 = vector.extract_strided_slice %0 {offsets = [0, 5], sizes = [8, 1], strides = [1, 1]} : vector<8x8xi32> to vector<8x1xi32>
    %34 = vector.broadcast %33 : vector<8x1xi32> to vector<8x128xi32>
    %35 = arith.cmpi eq, %34, %1 : vector<8x128xi32>
    %36 = arith.extui %35 : vector<8x128xi1> to vector<8x128xi32>
    %37 = arith.sitofp %36 : vector<8x128xi32> to vector<8x128xf32>
    %38 = arith.addf %32, %37 : vector<8x128xf32>
    %39 = vector.extract_strided_slice %0 {offsets = [0, 6], sizes = [8, 1], strides = [1, 1]} : vector<8x8xi32> to vector<8x1xi32>
    %40 = vector.broadcast %39 : vector<8x1xi32> to vector<8x128xi32>
    %41 = arith.cmpi eq, %40, %1 : vector<8x128xi32>
    %42 = arith.extui %41 : vector<8x128xi1> to vector<8x128xi32>
    %43 = arith.sitofp %42 : vector<8x128xi32> to vector<8x128xf32>
    %44 = arith.addf %38, %43 : vector<8x128xf32>
    %45 = vector.extract_strided_slice %0 {offsets = [0, 7], sizes = [8, 1], strides = [1, 1]} : vector<8x8xi32> to vector<8x1xi32>
    %46 = vector.broadcast %45 : vector<8x1xi32> to vector<8x128xi32>
    %47 = arith.cmpi eq, %46, %1 : vector<8x128xi32>
    %48 = arith.extui %47 : vector<8x128xi1> to vector<8x128xi32>
    %49 = arith.sitofp %48 : vector<8x128xi32> to vector<8x128xf32>
    %50 = arith.addf %44, %49 : vector<8x128xf32>
    %c0_1 = arith.constant 0 : index
    %c0_2 = arith.constant 0 : index
    %51 = vector.load %arg2[%c0_1, %c0_2] : memref<128x8xf32, #tpu.memory_space<vmem>>, vector<128x8xf32>
    %cst_3 = arith.constant dense<0.000000e+00> : vector<8x8xf32>
    %52 = tpu.matmul %50, %51, %cst_3 {dimension_numbers = #tpu.dot_dimension_numbers<[1], [0], [0], [1], [0, 0, 1, 1], [], []>} : vector<8x128xf32>, vector<128x8xf32>, vector<8x8xf32> -> vector<8x8xf32>
    %c0_4 = arith.constant 0 : index
    %c0_5 = arith.constant 0 : index
    %53 = vector.load %arg3[%c0_4, %c0_5] : memref<8x8xf32, #tpu.memory_space<vmem>>, vector<8x8xf32>
    tpu.vector_store %arg3[%c0_4, %c0_5], %52 {strides = array<i32>} : memref<8x8xf32, #tpu.memory_space<vmem>>, vector<8x8xf32>,
    return
  }
  func.func @transform_0(%arg0: i32) -> (i32, i32) {
    %c0_i32 = arith.constant 0 : i32
    %c0_i32_0 = arith.constant 0 : i32
    return %arg0, %c0_i32 : i32, i32
  }
  func.func @transform_1(%arg0: i32) -> (i32, i32) {
    %c0_i32 = arith.constant 0 : i32
    %c0_i32_0 = arith.constant 0 : i32
    %c0_i32_1 = arith.constant 0 : i32
    return %c0_i32, %c0_i32_0 : i32, i32
  }
  func.func @transform_2(%arg0: i32) -> (i32, i32) {
    %c0_i32 = arith.constant 0 : i32
    %c0_i32_0 = arith.constant 0 : i32
    return %arg0, %c0_i32 : i32, i32
  }
}

</mosaic_0001>

<bundles_post_ra>
// kernel: cbow_forward.1
= control target key start
LH: loop header
LB: loop body
LE: loop exit
PB: predicated region body
PF: predicated region fallthrough
CT: control target
= control target key end

     0   :  { %v266_v0 = vmov 2   ;;  %v267_v1 = vmov 0   ;;  %v268_v7 = vmov 0.0|0.0   ;;  %v269_v10 = vmov 3   ;;  %s346_s0 = inlined_call_operand.vmem [shape: s32[8,8], index: 0, kind: input, shape index: {}]   ;;  %s347_s1 = inlined_call_operand.vmem [shape: f32[128,8], index: 1, kind: input, shape index: {}]   ;;  %s348_s2 = inlined_call_operand.vmem [shape: f32[8,8], index: 2, kind: output, shape index: {}]  }
   0x1   :  { %259 = vset.pattern.permute.xlu1 %v266_v0  ;;  %257 = vset.pattern.permute.xlu0 %v267_v1  ;;  %v11_v2 = vld [vmem:[%s346_s0] sm:$0xff]  ;;  %v71_v4 = vld [vmem:[%s347_s1 + $0x8] sm:$0xff]  ;;  %v72_v5 = vld [vmem:[%s347_s1 + $0x10] sm:$0xff]  ;;  %v270_v11 = vmov 1   ;;  %v271_v17 = vmov 4   ;;  %v272_v18 = vmov 5   ;;  %v12_v35 = vlaneseq }
   0x2   :  { %v70_v3 = vld [vmem:[%s347_s1] sm:$0xff]  ;;  %29 = vperm.xlu1 %259, %v11_v2   ;;  %15 = vperm.xlu0 %257, %v11_v2   ;;  %v73_v6 = vld [vmem:[%s347_s1 + $0x18] sm:$0xff]  ;;  %v75_v13 = vld [vmem:[%s347_s1 + $0x28] sm:$0xff]  ;;  %v273_v22 = vmov 6   ;;  %v274_v23 = vmov 7   ;;  %vm275_vm0 = vmmov 0  }
   0x3   :  { %222 = vmatprep.subr.bf16.mxu0 %v268_v7  ;;  %v223_v8 = vpack.c.bf16 %v71_v4, %v70_v3  ;;  %v226_v9 = vpack.c.bf16 %v73_v6, %v72_v5  ;;  %v74_v12 = vld [vmem:[%s347_s1 + $0x20] sm:$0xff]  ;;  %v76_v15 = vld [vmem:[%s347_s1 + $0x30] sm:$0xff]  ;;  %v77_v16 = vld [vmem:[%s347_s1 + $0x38] sm:$0xff]  ;;  %v276_v31 = vmov 0.0   ;;  %v13_v38 = vand.u32 127, %v12_v35 }
   0x4   :  { %v229_v14 = vpack.c.bf16 %v75_v13, %v74_v12  ;;  %v232_v19 = vpack.c.bf16 %v77_v16, %v76_v15  ;;  %v78_v20 = vld [vmem:[%s347_s1 + $0x40] sm:$0xff]  ;;  %v79_v21 = vld [vmem:[%s347_s1 + $0x48] sm:$0xff]  ;;  %v80_v25 = vld [vmem:[%s347_s1 + $0x50] sm:$0xff]  ;;  %219 = vmatprep.mubr.msk.f32.mxu0 %vm275_vm0, %v276_v31  ;;  %vm156_vm9 = vcmask 64512  }
   0x5   :  { %224 = vmatpush3.bf16.msra.mxu0 %v223_v8  ;;  %v235_v24 = vpack.c.bf16 %v79_v21, %v78_v20  ;;  %v81_v26 = vld [vmem:[%s347_s1 + $0x58] sm:$0xff]  ;;  %v82_v28 = vld [vmem:[%s347_s1 + $0x60] sm:$0xff]  ;;  %v83_v29 = vld [vmem:[%s347_s1 + $0x68] sm:$0xff] }
   0x6   :  { %260 = vset.pattern.permute.xlu1 %v269_v10  ;;  %258 = vset.pattern.permute.xlu0 %v270_v11  ;;  %v238_v27 = vpack.c.bf16 %v81_v26, %v80_v25  ;;  %v241_v30 = vpack.c.bf16 %v83_v29, %v82_v28  ;;  %v84_v32 = vld [vmem:[%s347_s1 + $0x70] sm:$0xff]  ;;  %v85_v33 = vld [vmem:[%s347_s1 + $0x78] sm:$0xff] }
   0x7   :  { %36 = vperm.xlu1 %260, %v11_v2   ;;  %22 = vperm.xlu0 %258, %v11_v2   ;;  %v244_v34 = vpack.c.bf16 %v85_v33, %v84_v32 }
   0x8   :  { %225 = vmatprep.subr.bf16.mxu0 %v268_v7 }
   0x9   :  { %227 = vmatpush3.bf16.msra.mxu0 %v226_v9 }
   0xa   :  { %228 = vmatprep.subr.bf16.mxu0 %v268_v7 }
   0xb   :  { %261 = vset.pattern.permute.xlu1 %v271_v17  ;;  %262 = vset.pattern.permute.xlu0 %v272_v18 }
   0xc   :  { %43 = vperm.xlu1 %261, %v11_v2   ;;  %50 = vperm.xlu0 %262, %v11_v2  }
   0xd   :  { %230 = vmatpush3.bf16.msra.mxu0 %v229_v14 }
   0xe   :  { %231 = vmatprep.subr.bf16.mxu0 %v268_v7 }
  0x10   :  { %263 = vset.pattern.permute.xlu1 %v273_v22  ;;  %265 = vset.pattern.permute.xlu0 %v274_v23 }
  0x11   :  { %57 = vperm.xlu1 %263, %v11_v2   ;;  %233 = vmatpush3.bf16.msra.mxu0 %v232_v19 }
  0x12   :  { %234 = vmatprep.subr.bf16.mxu0 %v268_v7 }
  0x15   :  { %264 = vset.pattern.permute.xlu1 %v274_v23  ;;  %236 = vmatpush3.bf16.msra.mxu0 %v235_v24 }
  0x16   :  { %64 = vperm.xlu1 %264, %v11_v2   ;;  %237 = vmatprep.subr.bf16.mxu0 %v268_v7 }
  0x19   :  { %239 = vmatpush3.bf16.msra.mxu0 %v238_v27 }
  0x1a   :  { %240 = vmatprep.subr.bf16.mxu0 %v268_v7 }
  0x1d   :  { %242 = vmatpush3.bf16.msra.mxu0 %v241_v30 }
  0x1e   :  { %243 = vmatprep.subr.bf16.mxu0 %v268_v7 }
  0x21   :  { %245 = vmatpush3.bf16.msra.mxu0 %v244_v34 }
  0x81   :  { %v30_v36 = vpop.permute.xlu1 %29  ;;  %v16_v37 = vpop.permute.xlu0 %15 }
  0x82   :  { %vm17_vm1 = vcmp.eq.s32.totalorder %v16_v37, %v13_v38  ;;  %vm31_vm2 = vcmp.eq.s32.totalorder %v30_v36, %v13_v38 }
  0x83   :  { %v162_v41 = vsel %vm17_vm1, 1.0, %v276_v31  ;;  %v164_v44 = vsel %vm31_vm2, 1.0, %v276_v31 }
  0x86   :  { %v37_v39 = vpop.permute.xlu1 %36  ;;  %v23_v40 = vpop.permute.xlu0 %22 }
  0x87   :  { %vm24_vm3 = vcmp.eq.s32.totalorder %v23_v40, %v13_v38  ;;  %vm38_vm4 = vcmp.eq.s32.totalorder %v37_v39, %v13_v38 }
  0x88   :  { %v163_v42 = vsel %vm24_vm3, 1.0, %v276_v31  ;;  %v165_v48 = vsel %vm38_vm4, 1.0, %v276_v31 }
  0x89   :  { %v27_v43 = vadd.f32 %v163_v42, %v162_v41 }
  0x8b   :  { %v34_v45 = vadd.f32 %v164_v44, %v27_v43  ;;  %v44_v46 = vpop.permute.xlu1 %43  ;;  %v51_v47 = vpop.permute.xlu0 %50 }
  0x8c   :  { %vm45_vm5 = vcmp.eq.s32.totalorder %v44_v46, %v13_v38  ;;  %vm52_vm6 = vcmp.eq.s32.totalorder %v51_v47, %v13_v38 }
  0x8d   :  { %v41_v49 = vadd.f32 %v165_v48, %v34_v45  ;;  %v166_v50 = vsel %vm45_vm5, 1.0, %v276_v31  ;;  %v167_v52 = vsel %vm52_vm6, 1.0, %v276_v31 }
  0x8f   :  { %v48_v51 = vadd.f32 %v166_v50, %v41_v49 }
  0x90   :  { %v58_v53 = vpop.permute.xlu1 %57 }
  0x91   :  { %vm59_vm7 = vcmp.eq.s32.totalorder %v58_v53, %v13_v38  ;;  %v55_v54 = vadd.f32 %v167_v52, %v48_v51 }
  0x92   :  { %v168_v55 = vsel %vm59_vm7, 1.0, %v276_v31 }
  0x93   :  { %v62_v57 = vadd.f32 %v168_v55, %v55_v54 }
  0x95   :  { %v65_v56 = vpop.permute.xlu1 %64 }
  0x96   :  { %vm66_vm8 = vcmp.eq.s32.totalorder %v65_v56, %v13_v38 }
  0x97   :  { %v169_v58 = vsel %vm66_vm8, 1.0, %v276_v31 }
  0x98   :  { %v69_v59 = vadd.f32 %v169_v58, %v62_v57 }
  0x9a   :  { %220 = vmatmul.mubr.f32.vlgmr.msra.gmra.mrb[0].mxu0 %v69_v59 }
 0x16d   :  { %v152_v60 = vpop.f32.mrb[0].mxu0 }
 0x16e   :  { %157 = vst.msk [vmem:[%s348_s2] sm:$0xff] %vm156_vm9, %v152_v60  ;;  %v221_v61 = vpop.f32.mrb[1].mxu0 }

</bundles_post_ra>
